<compile_context>
chip_gen: v7x
topology: tpu7x:2x2x1
jax: 0.10.0
libtpu: 0.0.40
codegen_flags: <defaults>
</compile_context>

<pallas_src>
import math

import jax
import jax.numpy as jnp
from jax.experimental import pallas as pl
from jax.experimental.pallas import tpu as pltpu


_LANE = 128
_SUBLANE = 8
# Per-grid-step VMEM budget for (input block + output block), padded to the
# (8, 128) VMEM tiling.  Double-buffering doubles this; stays well under the
# 16/32 MiB scoped-VMEM defaults (v5e / v6e+v7x) and v7x's 64 MiB physical VMEM.
_STEP_VMEM_BUDGET = 6 * 1024 * 1024
_VMEM_LIMIT = 32 * 1024 * 1024


def _round_up(v, m):
    return (v + m - 1) // m * m


def _padded_tile_bytes(rows, cols, itemsize):
    """Approx VMEM footprint of a (rows, cols) block after (8, 128) tiling."""
    return _round_up(max(rows, 1), _SUBLANE) * _round_up(max(cols, 1), _LANE) * itemsize


def _divisors(n):
    ds = set()
    i = 1
    while i * i <= n:
        if n % i == 0:
            ds.add(i)
            ds.add(n // i)
        i += 1
    return sorted(ds)


def _pick_leading_tile(n, bytes_per_row, *, align=1):
    """Largest divisor of `n` whose block fits the per-step VMEM budget.

    Prefers >=2 grid steps (v7x has 2 TensorCores; a parallel grid axis is the only
    way this elementwise kernel uses both) and an even step count, as long as that
    costs at most 2x in tile size.  Note: exact divisors only, so pathological
    (large-prime) leading dims fall back to a single block.
    """
    aligned = [d for d in _divisors(n) if d % align == 0 or d == n]
    fitting = [d for d in aligned if d * bytes_per_row <= _STEP_VMEM_BUDGET]
    pool = fitting if fitting else [min(aligned)]
    best = max(pool)
    multi = [d for d in pool if n // d >= 2]
    if multi and max(multi) * 2 >= best:
        pool = multi
        best = max(pool)
    even = [d for d in pool if (n // d) % 2 == 0]
    if even and max(even) * 2 >= best:
        best = max(even)
    return best


# ----------------------------------------------------------------------------- kernels

def _crelu_lastdim_kernel(x_ref, o_ref):
    # x_ref: (tm, W); o_ref: (tm, 2W).
    x = x_ref[...]
    r = jnp.maximum(x, 0)          # relu(x)
    n = r - x                      # relu(-x) == relu(x) - x  (reuses r)
    # One lane-concatenated store per vreg row-group instead of two masked
    # half-width stores: halves vst pressure, the binding slot when W is small.
    o_ref[...] = jnp.concatenate([r, n], axis=-1).astype(o_ref.dtype)


def _crelu_lastdim_kernel_2store(x_ref, o_ref):
    # Fallback body (two masked half-stores) -- used only if the lane-concat
    # variant fails to lower on an older Mosaic.
    x = x_ref[...]
    w = x.shape[-1]
    r = jnp.maximum(x, 0)
    o_ref[:, :w] = r.astype(o_ref.dtype)
    o_ref[:, w:] = (r - x).astype(o_ref.dtype)


def _crelu_middim_kernel(x_ref, o_ref):
    # x_ref: (ta, B, C); o_ref: (ta, 2B, C).  C (lanes) kept full -> dense stores.
    x = x_ref[...]
    b = x.shape[1]
    r = jnp.maximum(x, 0)
    o_ref[:, :b, :] = r.astype(o_ref.dtype)
    o_ref[:, b:, :] = (r - x).astype(o_ref.dtype)


# ----------------------------------------------------------------------------- wrappers

def _lastdim_pallas_call(kernel, M, W, tm, dtype, itemsize, cost):
    step_bytes = tm * (_round_up(W, _LANE) + _round_up(2 * W, _LANE)) * itemsize
    return pl.pallas_call(
        kernel,
        out_shape=jax.ShapeDtypeStruct((M, 2 * W), dtype),
        grid_spec=pltpu.PrefetchScalarGridSpec(
            num_scalar_prefetch=0,
            grid=(M // tm,),
            in_specs=[pl.BlockSpec((tm, W), lambda i: (i, 0))],
            out_specs=pl.BlockSpec((tm, 2 * W), lambda i: (i, 0)),
        ),
        compiler_params=pltpu.CompilerParams(
            dimension_semantics=("parallel",),
            vmem_limit_bytes=max(_VMEM_LIMIT, 2 * step_bytes + (2 << 20)),
        ),
        cost_estimate=cost,
    )


def _crelu_ref(x, dim=-1):
    # Pure-JAX reference (also the small-input fast path: XLA fuses it).
    return jax.nn.relu(jnp.concatenate([x, -x], axis=dim))


def crelu(x: jax.Array, dim: int = -1, *, min_pallas_bytes: int = 1 << 20,
          force_pallas: bool = False) -> jax.Array:
    """CReLU: relu(concat([x, -x], axis=dim)) via Pallas TPU kernels."""
    ndim = x.ndim
    d = dim % ndim
    shape = x.shape
    itemsize = jnp.dtype(x.dtype).itemsize

    # Tiny inputs: kernel dispatch + ~0.35 us/grid-step overhead dwarfs the HBM
    # traffic -- let XLA fuse the elementwise op into its consumer instead.
    if not force_pallas and x.size * itemsize < min_pallas_bytes:
        return _crelu_ref(x, dim)

    out_shape_full = shape[:d] + (2 * shape[d],) + shape[d + 1:]
    cost = pl.CostEstimate(flops=2 * x.size, transcendentals=0,
                           bytes_accessed=3 * x.size * itemsize)

    A = math.prod(shape[:d])
    B = shape[d]
    C = math.prod(shape[d + 1:])

    if C == 1:
        # Concat axis is (effectively) the trailing axis: (M, W) -> (M, 2W).
        M, W = A, B
        x2 = x.reshape(M, W)
        row_bytes = (_round_up(W, _LANE) + _round_up(2 * W, _LANE)) * itemsize
        tm = _pick_leading_tile(M, row_bytes, align=_SUBLANE)
        try:
            out2 = _lastdim_pallas_call(_crelu_lastdim_kernel, M, W, tm,
                                        x.dtype, itemsize, cost)(x2)
        except Exception:
            # Safety net: two-half-store body (identical semantics, known-good).
            out2 = _lastdim_pallas_call(_crelu_lastdim_kernel_2store, M, W, tm,
                                        x.dtype, itemsize, cost)(x2)
        return out2.reshape(out_shape_full)

    # General case: concat along a middle axis; trailing dims stay on the lane
    # axis (lane-dense for e.g. channel concat on NCHW where C = H*W).
    x3 = x.reshape(A, B, C)
    row_bytes = (_padded_tile_bytes(B, C, itemsize)
                 + _padded_tile_bytes(2 * B, C, itemsize))
    ta = _pick_leading_tile(A, row_bytes, align=1)
    step_bytes = ta * row_bytes
    out3 = pl.pallas_call(
        _crelu_middim_kernel,
        out_shape=jax.ShapeDtypeStruct((A, 2 * B, C), x.dtype),
        grid_spec=pltpu.PrefetchScalarGridSpec(
            num_scalar_prefetch=0,
            grid=(A // ta,),
            in_specs=[pl.BlockSpec((ta, B, C), lambda i: (i, 0, 0))],
            out_specs=pl.BlockSpec((ta, 2 * B, C), lambda i: (i, 0, 0)),
        ),
        compiler_params=pltpu.CompilerParams(
            dimension_semantics=("parallel",),
            vmem_limit_bytes=max(_VMEM_LIMIT, 2 * step_bytes + (2 << 20)),
        ),
        cost_estimate=cost,
    )(x3)
    return out3.reshape(out_shape_full)


if __name__ == "__main__":
    key = jax.random.PRNGKey(0)
    # NCHW input, small shapes: batch=2, channels=4, spatial=16x16.
    x = jax.random.normal(key, (2, 4, 16, 16), dtype=jnp.float32)

    # Module default: dim=-1 -> (N, C, H, 2W).  force_pallas so the kernel runs
    # even though this demo input is below the "just let XLA fuse it" threshold.
    out = crelu(x, dim=-1, force_pallas=True)
    jax.block_until_ready(out)
    ref = _crelu_ref(x, dim=-1)
    assert out.shape == (2, 4, 16, 32), out.shape
    assert jnp.allclose(out, ref, atol=1e-6), "dim=-1 mismatch vs reference"

    # Channel-concat variant (dim=1) exercises the lane-dense 3-D path.
    out_c = crelu(x, dim=1, force_pallas=True)
    jax.block_until_ready(out_c)
    ref_c = _crelu_ref(x, dim=1)
    assert out_c.shape == (2, 8, 16, 16), out_c.shape
    assert jnp.allclose(out_c, ref_c, atol=1e-6), "dim=1 mismatch vs reference"

    print("KERNEL_OK")
</pallas_src>

<mosaic_0001>
module attributes {stable_mosaic.version = 11 : i64} {
  func.func @_crelu_lastdim_kernel(%arg0: i32, %arg1: memref<64x16xf32, #tpu.memory_space<vmem>>, %arg2: memref<64x32xf32, #tpu.memory_space<vmem>>) attributes {dimension_semantics = [#tpu.dimension_semantics<parallel>], iteration_bounds = array<i64: 2>, scalar_prefetch = 0 : i64, scratch_operands = 0 : i64, tpu.core_type = #tpu.core_type<tc>, window_params = [{transform_indices = @transform_0, window_bounds = array<i64: 64, 16>}, {transform_indices = @transform_1, window_bounds = array<i64: 64, 32>}]} {
    %c0 = arith.constant 0 : index
    %c0_0 = arith.constant 0 : index
    %0 = vector.load %arg1[%c0, %c0_0] : memref<64x16xf32, #tpu.memory_space<vmem>>, vector<64x16xf32>
    %cst = arith.constant 0.000000e+00 : f32
    %1 = vector.broadcast %cst : f32 to vector<64x16xf32>
    %2 = arith.maximumf %0, %1 : vector<64x16xf32>
    %3 = arith.subf %2, %0 : vector<64x16xf32>
    %4 = tpu.concatenate %2, %3 in 1 : vector<64x16xf32>, vector<64x16xf32> -> vector<64x32xf32>
    %c0_1 = arith.constant 0 : index
    %c0_2 = arith.constant 0 : index
    %5 = vector.load %arg2[%c0_1, %c0_2] : memref<64x32xf32, #tpu.memory_space<vmem>>, vector<64x32xf32>
    tpu.vector_store %arg2[%c0_1, %c0_2], %4 {strides = array<i32>} : memref<64x32xf32, #tpu.memory_space<vmem>>, vector<64x32xf32>,
    return
  }
  func.func @transform_0(%arg0: i32) -> (i32, i32) {
    %c0_i32 = arith.constant 0 : i32
    %c0_i32_0 = arith.constant 0 : i32
    return %arg0, %c0_i32 : i32, i32
  }
  func.func @transform_1(%arg0: i32) -> (i32, i32) {
    %c0_i32 = arith.constant 0 : i32
    %c0_i32_0 = arith.constant 0 : i32
    return %arg0, %c0_i32 : i32, i32
  }
}

module attributes {stable_mosaic.version = 11 : i64} {
  func.func @_crelu_lastdim_kernel_2store(%arg0: i32, %arg1: memref<64x16xf32, #tpu.memory_space<vmem>>, %arg2: memref<64x32xf32, #tpu.memory_space<vmem>>) attributes {dimension_semantics = [#tpu.dimension_semantics<parallel>], iteration_bounds = array<i64: 2>, scalar_prefetch = 0 : i64, scratch_operands = 0 : i64, tpu.core_type = #tpu.core_type<tc>, window_params = [{transform_indices = @transform_0, window_bounds = array<i64: 64, 16>}, {transform_indices = @transform_1, window_bounds = array<i64: 64, 32>}]} {
    %c0 = arith.constant 0 : index
    %c0_0 = arith.constant 0 : index
    %0 = vector.load %arg1[%c0, %c0_0] : memref<64x16xf32, #tpu.memory_space<vmem>>, vector<64x16xf32>
    %cst = arith.constant 0.000000e+00 : f32
    %1 = vector.broadcast %cst : f32 to vector<64x16xf32>
    %2 = arith.maximumf %0, %1 : vector<64x16xf32>
    %c0_1 = arith.constant 0 : index
    %c0_2 = arith.constant 0 : index
    %3 = vector.load %arg2[%c0_1, %c0_2] : memref<64x32xf32, #tpu.memory_space<vmem>>, vector<64x16xf32>
    tpu.vector_store %arg2[%c0_1, %c0_2], %2 {strides = array<i32>} : memref<64x32xf32, #tpu.memory_space<vmem>>, vector<64x16xf32>,
    %4 = arith.subf %2, %0 : vector<64x16xf32>
    %c0_3 = arith.constant 0 : index
    %c16 = arith.constant 16 : index
    %5 = vector.load %arg2[%c0_3, %c16] : memref<64x32xf32, #tpu.memory_space<vmem>>, vector<64x16xf32>
    tpu.vector_store %arg2[%c0_3, %c16], %4 {strides = array<i32>} : memref<64x32xf32, #tpu.memory_space<vmem>>, vector<64x16xf32>,
    return
  }
  func.func @transform_0(%arg0: i32) -> (i32, i32) {
    %c0_i32 = arith.constant 0 : i32
    %c0_i32_0 = arith.constant 0 : i32
    return %arg0, %c0_i32 : i32, i32
  }
  func.func @transform_1(%arg0: i32) -> (i32, i32) {
    %c0_i32 = arith.constant 0 : i32
    %c0_i32_0 = arith.constant 0 : i32
    return %arg0, %c0_i32 : i32, i32
  }
}

</mosaic_0001>

<bundles_post_ra>
// kernel: tpu_custom_call.1
= control target key start
LH: loop header
LB: loop body
LE: loop exit
PB: predicated region body
PF: predicated region fallthrough
CT: control target
= control target key end

     0   :  { %s289_s6 = smov 0   ;;  %s329_s0 = inlined_call_operand.vmem [shape: f32[128,16], index: 0, kind: input, shape index: {}]   ;;  %s330_s1 = inlined_call_operand.vmem [shape: f32[128,32], index: 1, kind: output, shape index: {}]  }
   0x1 LB: > { %s250_s7 = sadd.s32 4294967295, %s276_s6   ;;  %p254_p0 = scmp.ge.s32.totalorder %s276_s6, 1  ;;  %s276_s6 = sphi %s289_s6, %s11_s6  }
   0x2   : > { %p88_p1 = scmp.lt.s32.totalorder %s276_s6, 3 }
   0x4   : > { %p89_p2 = pnand %p254_p0, %p88_p1 }
   0x5   : > { %s255_s8 = sshll.u32 (!%p89_p2), %s250_s7, 3  ;;  %s278_s13 = smov (!%p89_p2), 16   ;;  %vm176_vm0 = vcmask (!%p89_p2), 130048   ;;  %vm185_vm1 = vcmask (!%p89_p2), 261120  }
   0x6   : > { %92 = sbr.rel (%p89_p2) target bundleno = 150 (0x96), region = 24  ;;  %p109_p3 = scmp.lt.s32.totalorder (!%p89_p2), %s255_s8, 15 }
   0xd   : > { %s332_s8 = smov (!%p109_p3, %s255_s8), 15 }
   0xe   : > { %s256_s9 = sshll.u32 %s332_s8, 3 }
   0xf   : > { %s112_s12 = scalar_lea.vmem %s329_s0, %s256_s9  ;;  %s118_s16 = scalar_lea.vmem %s330_s1, %s256_s9 }
  0x10   : > { %v122_v0 = vld [vmem:[%s112_s12 + $0x10] sm:$0xff]  ;;  %v120_v1 = vld [vmem:[%s112_s12] sm:$0xff]  ;;  %v123_v2 = vld [vmem:[%s112_s12 + $0x18] sm:$0xff] }
  0x11   : > { %v130_v3 = vmax.f32 %v122_v0, 0.0  ;;  %v128_v4 = vmax.f32 %v120_v1, 0.0  ;;  %v131_v5 = vmax.f32 %v123_v2, 0.0  ;;  %v121_v6 = vld [vmem:[%s112_s12 + $0x8] sm:$0xff]  ;;  %v124_v9 = vld [vmem:[%s112_s12 + $0x20] sm:$0xff]  ;;  %v127_v16 = vld [vmem:[%s112_s12 + $0x38] sm:$0xff] }
  0x12   : > { %v129_v7 = vmax.f32 %v121_v6, 0.0  ;;  %v125_v8 = vld [vmem:[%s112_s12 + $0x28] sm:$0xff]  ;;  %v132_v15 = vmax.f32 %v124_v9, 0.0  ;;  %v126_v17 = vld [vmem:[%s112_s12 + $0x30] sm:$0xff]  ;;  %v135_v20 = vmax.f32 %v127_v16, 0.0 }
  0x13   : > { %v138_v10 = vsub.f32 %v130_v3, %v122_v0  ;;  %v136_v11 = vsub.f32 %v128_v4, %v120_v1  ;;  %v139_v12 = vsub.f32 %v131_v5, %v123_v2  ;;  %v133_v14 = vmax.f32 %v125_v8, 0.0 }
  0x14   : > { %v137_v13 = vsub.f32 %v129_v7, %v121_v6  ;;  %v140_v19 = vsub.f32 %v132_v15, %v124_v9  ;;  %v134_v21 = vmax.f32 %v126_v17, 0.0  ;;  %v143_v22 = vsub.f32 %v135_v20, %v127_v16 }
  0x15   : > { %156 = vrot.lane.b32.xlu1 %v138_v10, %s278_s13  ;;  %152 = vrot.lane.b32.xlu0 %v136_v11, %s278_s13  ;;  %v141_v18 = vsub.f32 %v133_v14, %v125_v8 }
  0x16   : > { %v142_v23 = vsub.f32 %v134_v21, %v126_v17 }
  0x19   : > { %158 = vrot.lane.b32.xlu1 %v139_v12, %s278_s13  ;;  %154 = vrot.lane.b32.xlu0 %v137_v13, %s278_s13 }
  0x1d   : > { %162 = vrot.lane.b32.xlu1 %v141_v18, %s278_s13  ;;  %160 = vrot.lane.b32.xlu0 %v140_v19, %s278_s13 }
  0x21   : > { %166 = vrot.lane.b32.xlu1 %v143_v22, %s278_s13  ;;  %164 = vrot.lane.b32.xlu0 %v142_v23, %s278_s13 }
  0x87   : > { %v157_v24 = vpop.permute.xlu1 %156  ;;  %v153_v25 = vpop.permute.xlu0 %152 }
  0x88   : > { %v179_v26 = vsel %vm176_vm0, %v130_v3, %v157_v24  ;;  %v177_v27 = vsel %vm176_vm0, %v128_v4, %v153_v25 }
  0x89   : > { %188 = vst.msk [vmem:[%s118_s16 + $0x10] sm:$0xff] %vm185_vm1, %v179_v26  ;;  %186 = vst.msk [vmem:[%s118_s16] sm:$0xff] %vm185_vm1, %v177_v27 }
  0x8b   : > { %v159_v28 = vpop.permute.xlu1 %158  ;;  %v155_v29 = vpop.permute.xlu0 %154 }
  0x8c   : > { %v180_v30 = vsel %vm176_vm0, %v131_v5, %v159_v28  ;;  %v178_v31 = vsel %vm176_vm0, %v129_v7, %v155_v29 }
  0x8d   : > { %189 = vst.msk [vmem:[%s118_s16 + $0x18] sm:$0xff] %vm185_vm1, %v180_v30  ;;  %187 = vst.msk [vmem:[%s118_s16 + $0x8] sm:$0xff] %vm185_vm1, %v178_v31 }
  0x8f   : > { %v163_v32 = vpop.permute.xlu1 %162  ;;  %v161_v33 = vpop.permute.xlu0 %160 }
  0x90   : > { %v182_v34 = vsel %vm176_vm0, %v133_v14, %v163_v32  ;;  %v181_v35 = vsel %vm176_vm0, %v132_v15, %v161_v33 }
  0x91   : > { %191 = vst.msk [vmem:[%s118_s16 + $0x28] sm:$0xff] %vm185_vm1, %v182_v34  ;;  %190 = vst.msk [vmem:[%s118_s16 + $0x20] sm:$0xff] %vm185_vm1, %v181_v35 }
  0x93   : > { %v167_v36 = vpop.permute.xlu1 %166  ;;  %v165_v37 = vpop.permute.xlu0 %164 }
  0x94   : > { %v184_v38 = vsel %vm176_vm0, %v135_v20, %v167_v36  ;;  %v183_v39 = vsel %vm176_vm0, %v134_v21, %v165_v37 }
  0x95   : > { %193 = vst.msk [vmem:[%s118_s16 + $0x38] sm:$0xff] %vm185_vm1, %v184_v38  ;;  %192 = vst.msk [vmem:[%s118_s16 + $0x30] sm:$0xff] %vm185_vm1, %v183_v39 }
  0x96 PF: > { %s11_s6 = sadd.s32 1, %s276_s6  }
  0x97   : > { %p8_p4 = scmp.ge.s32.totalorder %s11_s6, 4  }
  0x99   :  { %10 = sbr.rel (!%p8_p4) target bundleno = 1 (0x1), region = 54 }

// kernel: tpu_custom_call.1
= control target key start
LH: loop header
LB: loop body
LE: loop exit
PB: predicated region body
PF: predicated region fallthrough
CT: control target
= control target key end

     0   :  { %s289_s6 = smov 0   ;;  %s340_s0 = inlined_call_operand.vmem [shape: f32[128,16], index: 0, kind: input, shape index: {}]   ;;  %s341_s1 = inlined_call_operand.vmem [shape: f32[128,32], index: 1, kind: output, shape index: {}]  }
   0x1 LB: > { %s250_s7 = sadd.s32 4294967295, %s276_s6   ;;  %p254_p0 = scmp.ge.s32.totalorder %s276_s6, 1  ;;  %s276_s6 = sphi %s289_s6, %s11_s6  }
   0x2   : > { %p88_p1 = scmp.lt.s32.totalorder %s276_s6, 3 }
   0x4   : > { %p89_p2 = pnand %p254_p0, %p88_p1 }
   0x5   : > { %s255_s8 = sshll.u32 (!%p89_p2), %s250_s7, 3  ;;  %vm136_vm0 = vcmask (!%p89_p2), 130048   ;;  %s278_s16 = smov (!%p89_p2), 16   ;;  %vm185_vm1 = vcmask (!%p89_p2), 261248  }
   0x6   : > { %92 = sbr.rel (%p89_p2) target bundleno = 149 (0x95), region = 24  ;;  %p109_p3 = scmp.lt.s32.totalorder (!%p89_p2), %s255_s8, 15 }
   0xd   : > { %s343_s8 = smov (!%p109_p3, %s255_s8), 15 }
   0xe   : > { %s256_s9 = sshll.u32 %s343_s8, 3 }
   0xf   : > { %s112_s12 = scalar_lea.vmem %s340_s0, %s256_s9  ;;  %s303_s15 = scalar_lea.vmem %s341_s1, %s256_s9 }
  0x10   : > { %v122_v0 = vld [vmem:[%s112_s12 + $0x10] sm:$0xff]  ;;  %v120_v1 = vld [vmem:[%s112_s12] sm:$0xff]  ;;  %v123_v2 = vld [vmem:[%s112_s12 + $0x18] sm:$0xff] }
  0x11   : > { %v130_v3 = vmax.f32 %v122_v0, 0.0  ;;  %v128_v4 = vmax.f32 %v120_v1, 0.0  ;;  %v131_v5 = vmax.f32 %v123_v2, 0.0  ;;  %v121_v6 = vld [vmem:[%s112_s12 + $0x8] sm:$0xff]  ;;  %v124_v8 = vld [vmem:[%s112_s12 + $0x20] sm:$0xff]  ;;  %v127_v12 = vld [vmem:[%s112_s12 + $0x38] sm:$0xff] }
  0x12   : > { %v125_v7 = vld [vmem:[%s112_s12 + $0x28] sm:$0xff]  ;;  %v129_v9 = vmax.f32 %v121_v6, 0.0  ;;  %v132_v11 = vmax.f32 %v124_v8, 0.0  ;;  %v126_v13 = vld [vmem:[%s112_s12 + $0x30] sm:$0xff]  ;;  %v135_v16 = vmax.f32 %v127_v12, 0.0 }
  0x13   : > { %v133_v10 = vmax.f32 %v125_v7, 0.0  ;;  %v147_v14 = vsub.f32 %v130_v3, %v122_v0  ;;  %v145_v15 = vsub.f32 %v128_v4, %v120_v1  ;;  %139 = vst.msk [vmem:[%s303_s15 + $0x10] sm:$0xff] %vm136_vm0, %v130_v3  ;;  %137 = vst.msk [vmem:[%s303_s15] sm:$0xff] %vm136_vm0, %v128_v4  ;;  %v134_v17 = vmax.f32 %v126_v13, 0.0 }
  0x14   : > { %140 = vst.msk [vmem:[%s303_s15 + $0x18] sm:$0xff] %vm136_vm0, %v131_v5  ;;  %138 = vst.msk [vmem:[%s303_s15 + $0x8] sm:$0xff] %vm136_vm0, %v129_v9  ;;  %v148_v18 = vsub.f32 %v131_v5, %v123_v2  ;;  %v146_v19 = vsub.f32 %v129_v9, %v121_v6  ;;  %v149_v21 = vsub.f32 %v132_v11, %v124_v8 }
  0x15   : > { %141 = vst.msk [vmem:[%s303_s15 + $0x20] sm:$0xff] %vm136_vm0, %v132_v11  ;;  %142 = vst.msk [vmem:[%s303_s15 + $0x28] sm:$0xff] %vm136_vm0, %v133_v10  ;;  %165 = vrot.lane.b32.xlu1 %v147_v14, %s278_s16  ;;  %161 = vrot.lane.b32.xlu0 %v145_v15, %s278_s16  ;;  %v150_v20 = vsub.f32 %v133_v10, %v125_v7  ;;  %v152_v22 = vsub.f32 %v135_v16, %v127_v12 }
  0x16   : > { %144 = vst.msk [vmem:[%s303_s15 + $0x38] sm:$0xff] %vm136_vm0, %v135_v16  ;;  %143 = vst.msk [vmem:[%s303_s15 + $0x30] sm:$0xff] %vm136_vm0, %v134_v17  ;;  %v151_v23 = vsub.f32 %v134_v17, %v126_v13 }
  0x19   : > { %167 = vrot.lane.b32.xlu1 %v148_v18, %s278_s16  ;;  %163 = vrot.lane.b32.xlu0 %v146_v19, %s278_s16 }
  0x1d   : > { %171 = vrot.lane.b32.xlu1 %v150_v20, %s278_s16  ;;  %169 = vrot.lane.b32.xlu0 %v149_v21, %s278_s16 }
  0x21   : > { %175 = vrot.lane.b32.xlu1 %v152_v22, %s278_s16  ;;  %173 = vrot.lane.b32.xlu0 %v151_v23, %s278_s16 }
  0x87   : > { %v166_v24 = vpop.permute.xlu1 %165  ;;  %v162_v25 = vpop.permute.xlu0 %161 }
  0x88   : > { %188 = vst.msk [vmem:[%s303_s15 + $0x10] sm:$0xff] %vm185_vm1, %v166_v24  ;;  %186 = vst.msk [vmem:[%s303_s15] sm:$0xff] %vm185_vm1, %v162_v25 }
  0x8b   : > { %v168_v26 = vpop.permute.xlu1 %167  ;;  %v164_v27 = vpop.permute.xlu0 %163 }
  0x8c   : > { %189 = vst.msk [vmem:[%s303_s15 + $0x18] sm:$0xff] %vm185_vm1, %v168_v26  ;;  %187 = vst.msk [vmem:[%s303_s15 + $0x8] sm:$0xff] %vm185_vm1, %v164_v27 }
  0x8f   : > { %v172_v28 = vpop.permute.xlu1 %171  ;;  %v170_v29 = vpop.permute.xlu0 %169 }
  0x90   : > { %191 = vst.msk [vmem:[%s303_s15 + $0x28] sm:$0xff] %vm185_vm1, %v172_v28  ;;  %190 = vst.msk [vmem:[%s303_s15 + $0x20] sm:$0xff] %vm185_vm1, %v170_v29 }
  0x93   : > { %v176_v30 = vpop.permute.xlu1 %175  ;;  %v174_v31 = vpop.permute.xlu0 %173 }
  0x94   : > { %193 = vst.msk [vmem:[%s303_s15 + $0x38] sm:$0xff] %vm185_vm1, %v176_v30  ;;  %192 = vst.msk [vmem:[%s303_s15 + $0x30] sm:$0xff] %vm185_vm1, %v174_v31 }
  0x95 PF: > { %s11_s6 = sadd.s32 1, %s276_s6  }
  0x96   : > { %p8_p4 = scmp.ge.s32.totalorder %s11_s6, 4  }
  0x98   :  { %10 = sbr.rel (!%p8_p4) target bundleno = 1 (0x1), region = 54 }

</bundles_post_ra>
